<compile_context>
chip_gen: v7x
topology: tpu7x:2x2x1
jax: 0.10.0
libtpu: 0.0.40
codegen_flags: <defaults>
</compile_context>

<pallas_src>
import functools

import jax
import jax.numpy as jnp
from jax.experimental import pallas as pl
from jax.experimental.pallas import tpu as pltpu

EPS = 1e-12  # F.normalize default eps


def _round_up(v, m):
    return ((v + m - 1) // m) * m


def ocra_head_kernel(x_ref, w_ref, inv_x_ref, inv_w_ref, o_ref, *, f32_highest):
    k = pl.program_id(2)

    @pl.when(k == 0)
    def _init():
        o_ref[...] = jnp.zeros_like(o_ref)

    # Raw (un-normalized) matmul, f32 accumulation directly into the resident
    # output tile.  Default path: bf16 operands (cast once in the wrapper) on
    # the bf16-native MXU.  Optional f32 path uses HIGHEST precision to match
    # the reference's f32 matmul exactly.
    if f32_highest:
        o_ref[...] += jnp.dot(x_ref[...], w_ref[...],
                              preferred_element_type=jnp.float32,
                              precision=jax.lax.Precision.HIGHEST)
    else:
        o_ref[...] += jnp.dot(x_ref[...], w_ref[...],
                              preferred_element_type=jnp.float32)

    @pl.when(k == pl.num_programs(2) - 1)
    def _finalize():
        # Two broadcast multiplies with the precomputed f32 inverse norms
        # (10x output scale already folded into inv_w).
        o_ref[...] = o_ref[...] * inv_x_ref[...] * inv_w_ref[...]


def ocra_head_forward(x, weight, *, tm=512, tn=512, tk=1024, use_bf16_mxu=True):
    """out = 10 * (normalize(x, dim=1) @ normalize(weight, dim=0)).

    x: (N, in_dim), weight: (in_dim, out_dim).
    Tile sizes are aligned to (8, 128) and clamped to the padded problem size.
    """
    n, in_dim = x.shape
    in_dim_w, out_dim = weight.shape
    assert in_dim == in_dim_w

    x = x.astype(jnp.float32)
    weight = weight.astype(jnp.float32)

    # Hoisted normalization factors, computed once in full f32 precision.
    # rsqrt(sumsq + eps^2) == 1 / max(||.||, eps) to fp tolerance.
    inv_x = jax.lax.rsqrt(
        jnp.sum(x * x, axis=1, keepdims=True) + EPS * EPS)            # (N, 1)
    inv_w = 10.0 * jax.lax.rsqrt(
        jnp.sum(weight * weight, axis=0, keepdims=True) + EPS * EPS)  # (1, out)

    # Align requested tiles to (sublane=8, lane=128), then clamp to problem.
    tm = _round_up(tm, 8)
    tn = _round_up(tn, 128)
    tk = _round_up(tk, 128)
    tm = min(tm, _round_up(n, 8))
    tn = min(tn, _round_up(out_dim, 128))     # lane-dense output tile
    tk = min(tk, _round_up(in_dim, 128))

    pm, pn, pk = _round_up(n, tm), _round_up(out_dim, tn), _round_up(in_dim, tk)
    pad_m, pad_n, pad_k = pm - n, pn - out_dim, pk - in_dim

    in_dtype = jnp.bfloat16 if use_bf16_mxu else jnp.float32
    xp = (jnp.pad(x, ((0, pad_m), (0, pad_k)))
          if (pad_m or pad_k) else x).astype(in_dtype)
    wp = (jnp.pad(weight, ((0, pad_k), (0, pad_n)))
          if (pad_k or pad_n) else weight).astype(in_dtype)
    inv_xp = jnp.pad(inv_x, ((0, pad_m), (0, 0))) if pad_m else inv_x
    inv_wp = jnp.pad(inv_w, ((0, 0), (0, pad_n))) if pad_n else inv_w

    # NOTE (v7x): for large problems prefer tiles that keep >= 2 blocks along
    # a "parallel" axis so both TensorCores get work; tiny demo shapes below
    # collapse to a 1x1xK grid, which is fine at that size.
    grid = (pm // tm, pn // tn, pk // tk)

    # VMEM budget derived from the tiles (double-buffered inputs + resident
    # output tile), capped at 48 MiB to stay safe on v7x's 64 MiB physical.
    in_item = 2 if use_bf16_mxu else 4
    vmem_needed = (2 * (tm * tk + tk * tn) * in_item
                   + 2 * tm * tn * 4
                   + 2 * (tm + tn) * 4)
    vmem_limit = min(48 * 1024 * 1024,
                     max(32 * 1024 * 1024, 2 * vmem_needed))

    kernel = functools.partial(ocra_head_kernel, f32_highest=not use_bf16_mxu)

    out_p = pl.pallas_call(
        kernel,
        out_shape=jax.ShapeDtypeStruct((pm, pn), jnp.float32),
        grid_spec=pltpu.PrefetchScalarGridSpec(
            num_scalar_prefetch=0,
            grid=grid,
            in_specs=[
                pl.BlockSpec((tm, tk), lambda i, j, k: (i, k)),
                pl.BlockSpec((tk, tn), lambda i, j, k: (k, j)),
                pl.BlockSpec((tm, 1), lambda i, j, k: (i, 0)),
                pl.BlockSpec((1, tn), lambda i, j, k: (0, j)),
            ],
            out_specs=pl.BlockSpec((tm, tn), lambda i, j, k: (i, j)),
        ),
        compiler_params=pltpu.CompilerParams(
            dimension_semantics=("parallel", "parallel", "arbitrary"),
            vmem_limit_bytes=vmem_limit,
        ),
    )(xp, wp, inv_xp, inv_wp)

    if pad_m or pad_n:
        return out_p[:n, :out_dim]
    return out_p


def init_normed_linear_weight(key, in_features, out_features):
    """Replicates: uniform_(-1, 1).renorm_(2, 1, 1e-5).mul_(1e5).

    renorm_(2, 1, 1e-5) clamps each column's L2 norm to 1e-5 and .mul_(1e5)
    scales back up -> every column ends up with (approximately) unit L2 norm.
    """
    w = jax.random.uniform(key, (in_features, out_features),
                           dtype=jnp.float32, minval=-1.0, maxval=1.0)
    col_norm = jnp.sqrt(jnp.sum(w * w, axis=0, keepdims=True))
    scale = jnp.where(col_norm > 1e-5, (1e-5 / (col_norm + 1e-7)) * 1e5, 1e5)
    return w * scale


def _reference(x, w):
    xn = x / jnp.maximum(jnp.linalg.norm(x, axis=1, keepdims=True), EPS)
    wn = w / jnp.maximum(jnp.linalg.norm(w, axis=0, keepdims=True), EPS)
    return 10.0 * jnp.matmul(xn, wn, precision=jax.lax.Precision.HIGHEST)


if __name__ == "__main__":
    key = jax.random.PRNGKey(0)
    k_x, k_w, k_x2, k_w2 = jax.random.split(key, 4)

    # 1) Tiny demo shape (module's toy usage), default bf16 MXU path.
    batch, in_dim, out_dim = 8, 32, 16
    x = jax.random.normal(k_x, (batch, in_dim), dtype=jnp.float32)
    w = init_normed_linear_weight(k_w, in_dim, out_dim)
    out = ocra_head_forward(x, w)
    jax.block_until_ready(out)
    assert out.shape == (batch, out_dim)
    assert jnp.allclose(out, _reference(x, w), atol=1e-1, rtol=2e-2)

    # 2) Multi-tile grid (grid = (2, 2, 3) with these tiles): exercises the
    #    K-accumulation + in-place finalize path, default bf16 MXU.
    b2, k2, n2 = 32, 384, 256
    x2 = jax.random.normal(k_x2, (b2, k2), dtype=jnp.float32)
    w2 = init_normed_linear_weight(k_w2, k2, n2)
    out2 = ocra_head_forward(x2, w2, tm=16, tn=128, tk=128)
    jax.block_until_ready(out2)
    assert out2.shape == (b2, n2)
    assert jnp.allclose(out2, _reference(x2, w2), atol=1e-1, rtol=2e-2)

    # 3) Exact-parity f32 path (Precision.HIGHEST matmul), tight tolerance.
    out3 = ocra_head_forward(x2, w2, tm=16, tn=128, tk=128,
                             use_bf16_mxu=False)
    jax.block_until_ready(out3)
    assert jnp.allclose(out3, _reference(x2, w2), atol=2e-4, rtol=1e-4)

    print("KERNEL_OK")
</pallas_src>

<mosaic_0001>
module attributes {stable_mosaic.version = 11 : i64} {
  func.func @ocra_head_kernel(%arg0: i32, %arg1: i32, %arg2: i32, %arg3: memref<8x128xbf16, #tpu.memory_space<vmem>>, %arg4: memref<128x128xbf16, #tpu.memory_space<vmem>>, %arg5: memref<8x1xf32, #tpu.memory_space<vmem>>, %arg6: memref<1x128xf32, #tpu.memory_space<vmem>>, %arg7: memref<8x128xf32, #tpu.memory_space<vmem>>) attributes {dimension_semantics = [#tpu.dimension_semantics<parallel>, #tpu.dimension_semantics<parallel>, #tpu.dimension_semantics<arbitrary>], iteration_bounds = array<i64: 1, 1, 1>, scalar_prefetch = 0 : i64, scratch_operands = 0 : i64, tpu.core_type = #tpu.core_type<tc>, window_params = [{transform_indices = @transform_0, window_bounds = array<i64: 8, 128>}, {transform_indices = @transform_1, window_bounds = array<i64: 128, 128>}, {transform_indices = @transform_2, window_bounds = array<i64: 8, 1>}, {transform_indices = @transform_3, window_bounds = array<i64: 1, 128>}, {transform_indices = @transform_4, window_bounds = array<i64: 8, 128>}]} {
    %c0_i32 = arith.constant 0 : i32
    %0 = arith.cmpi eq, %arg2, %c0_i32 : i32
    %1 = arith.extui %0 : i1 to i32
    %c0_i32_0 = arith.constant 0 : i32
    %2 = arith.cmpi ne, %1, %c0_i32_0 : i32
    scf.if %2 {
      %cst_10 = arith.constant 0.000000e+00 : f32
      %12 = vector.broadcast %cst_10 : f32 to vector<8x128xf32>
      %c0_11 = arith.constant 0 : index
      %c0_12 = arith.constant 0 : index
      %13 = vector.load %arg7[%c0_11, %c0_12] : memref<8x128xf32, #tpu.memory_space<vmem>>, vector<8x128xf32>
      tpu.vector_store %arg7[%c0_11, %c0_12], %12 {strides = array<i32>} : memref<8x128xf32, #tpu.memory_space<vmem>>, vector<8x128xf32>,
    } else {
    }
    %c0 = arith.constant 0 : index
    %c0_1 = arith.constant 0 : index
    %3 = vector.load %arg7[%c0, %c0_1] : memref<8x128xf32, #tpu.memory_space<vmem>>, vector<8x128xf32>
    %c0_2 = arith.constant 0 : index
    %c0_3 = arith.constant 0 : index
    %4 = vector.load %arg3[%c0_2, %c0_3] : memref<8x128xbf16, #tpu.memory_space<vmem>>, vector<8x128xbf16>
    %c0_4 = arith.constant 0 : index
    %c0_5 = arith.constant 0 : index
    %5 = vector.load %arg4[%c0_4, %c0_5] : memref<128x128xbf16, #tpu.memory_space<vmem>>, vector<128x128xbf16>
    %cst = arith.constant dense<0.000000e+00> : vector<8x128xf32>
    %6 = tpu.matmul %4, %5, %cst {dimension_numbers = #tpu.dot_dimension_numbers<[1], [0], [0], [1], [0, 0, 1, 1], [], []>} : vector<8x128xbf16>, vector<128x128xbf16>, vector<8x128xf32> -> vector<8x128xf32>
    %7 = arith.addf %3, %6 : vector<8x128xf32>
    %c0_6 = arith.constant 0 : index
    %c0_7 = arith.constant 0 : index
    %8 = vector.load %arg7[%c0_6, %c0_7] : memref<8x128xf32, #tpu.memory_space<vmem>>, vector<8x128xf32>
    tpu.vector_store %arg7[%c0_6, %c0_7], %7 {strides = array<i32>} : memref<8x128xf32, #tpu.memory_space<vmem>>, vector<8x128xf32>,
    %c0_i32_8 = arith.constant 0 : i32
    %9 = arith.cmpi eq, %arg2, %c0_i32_8 : i32
    %10 = arith.extui %9 : i1 to i32
    %c0_i32_9 = arith.constant 0 : i32
    %11 = arith.cmpi ne, %10, %c0_i32_9 : i32
    scf.if %11 {
      %c0_10 = arith.constant 0 : index
      %c0_11 = arith.constant 0 : index
      %12 = vector.load %arg7[%c0_10, %c0_11] : memref<8x128xf32, #tpu.memory_space<vmem>>, vector<8x128xf32>
      %c0_12 = arith.constant 0 : index
      %c0_13 = arith.constant 0 : index
      %13 = vector.load %arg5[%c0_12, %c0_13] : memref<8x1xf32, #tpu.memory_space<vmem>>, vector<8x1xf32>
      %14 = vector.broadcast %13 : vector<8x1xf32> to vector<8x128xf32>
      %15 = arith.mulf %12, %14 : vector<8x128xf32>
      %c0_14 = arith.constant 0 : index
      %c0_15 = arith.constant 0 : index
      %16 = vector.load %arg6[%c0_14, %c0_15] : memref<1x128xf32, #tpu.memory_space<vmem>>, vector<1x128xf32>
      %17 = vector.broadcast %16 : vector<1x128xf32> to vector<8x128xf32>
      %18 = arith.mulf %15, %17 : vector<8x128xf32>
      %c0_16 = arith.constant 0 : index
      %c0_17 = arith.constant 0 : index
      %19 = vector.load %arg7[%c0_16, %c0_17] : memref<8x128xf32, #tpu.memory_space<vmem>>, vector<8x128xf32>
      tpu.vector_store %arg7[%c0_16, %c0_17], %18 {strides = array<i32>} : memref<8x128xf32, #tpu.memory_space<vmem>>, vector<8x128xf32>,
    } else {
    }
    return
  }
  func.func @transform_0(%arg0: i32, %arg1: i32, %arg2: i32) -> (i32, i32) {
    %c0_i32 = arith.constant 0 : i32
    return %arg0, %arg2 : i32, i32
  }
  func.func @transform_1(%arg0: i32, %arg1: i32, %arg2: i32) -> (i32, i32) {
    %c0_i32 = arith.constant 0 : i32
    return %arg2, %arg1 : i32, i32
  }
  func.func @transform_2(%arg0: i32, %arg1: i32, %arg2: i32) -> (i32, i32) {
    %c0_i32 = arith.constant 0 : i32
    %c0_i32_0 = arith.constant 0 : i32
    return %arg0, %c0_i32 : i32, i32
  }
  func.func @transform_3(%arg0: i32, %arg1: i32, %arg2: i32) -> (i32, i32) {
    %c0_i32 = arith.constant 0 : i32
    %c0_i32_0 = arith.constant 0 : i32
    return %c0_i32, %arg1 : i32, i32
  }
  func.func @transform_4(%arg0: i32, %arg1: i32, %arg2: i32) -> (i32, i32) {
    %c0_i32 = arith.constant 0 : i32
    return %arg0, %arg1 : i32, i32
  }
}

</mosaic_0001>

<bundles_post_ra>
// kernel: tpu_custom_call.1
= control target key start
LH: loop header
LB: loop body
LE: loop exit
PB: predicated region body
PF: predicated region fallthrough
CT: control target
= control target key end

     0   :  { %9 = vsyncpa [#allocation3], 0  ;;  %s348_s0 = inlined_call_operand.vmem [shape: bf16[8,128], index: 0, kind: input, shape index: {}]   ;;  %s349_s1 = inlined_call_operand.hbm [shape: bf16[128,128], index: 1, kind: input, shape index: {}]   ;;  %s350_s2 = inlined_call_operand.vmem [shape: f32[8,1], index: 2, kind: input, shape index: {}]   ;;  %s351_s3 = inlined_call_operand.vmem [shape: f32[1,128], index: 3, kind: input, shape index: {}]   ;;  %s352_s4 = inlined_call_operand.hbm [shape: f32[8,128], index: 4, kind: output, shape index: {}]  }
   0x1   :  { %10 = vsyncpa [#allocation4], 0  ;;  %s283_s15 = smov [#allocation2]   ;;  %s235_s19 = scalar_lea.hbm %s349_s1, 1024 }
   0x2   :  { %s18_s16 = sshll.u32 %s283_s15, 4  ;;  %p236_p0 = scmp.ne.s32.totalorder %s349_s1, %s235_s19  ;;  %s19_s16 = int_to_ptr.vmem [resolvable:$true] %s18_s16 }
   0x3   :  { %p239_p1 = scmp.lt.u32.totalorder %s235_s19, %s349_s1 }
   0x5   :  { %p241_p2 = pnand %p239_p1, %p236_p0 }
   0x7   :  { %244 = shalt.err (!%p241_p2)
}
   0x8   :  { %s245_s24 = scalar_lea.vmem %s19_s16, 1024  ;;  %p250_p4 = scmp.lt.s32.totalorder %s19_s16, %s19_s16 }
   0x9   :  { %p246_p3 = scmp.ne.s32.totalorder %s19_s16, %s245_s24  ;;  %p251_p5 = scmp.lt.s32.totalorder %s245_s24, %s245_s24 }
   0xb   :  { %p252_p6 = por %p251_p5, %p250_p4 }
   0xd   :  { %p253_p7 = pnand %p252_p6, %p246_p3 }
   0xf   :  { %256 = shalt.err (!%p253_p7)
}
  0x10   :  { %s284_s25 = smov 64   ;;  %s285_s26 = smov 4  }
  0x11   :  { %24 = dma.hbm_to_vmem [thread:$0]  %s349_s1, 1024, %s19_s16, [#allocation3], %s284_s25, %s284_s25, %s285_s26  }
  0x12   :  { %279 = dma.done.wait [#allocation3], 1024  }
  0x13   :  { %280 = vsyncadd [#allocation3], 4294966272  ;;  %v286_v0 = vmov 0.0   ;;  %vm287_vm0 = vmmov 0   ;;  %v288_v1 = vmov 0   ;;  %v227_v2 = vld [vmem:[#allocation2] sm:$0xff]  }
  0x14   :  { %199 = vmatprep.subr.bf16.mxu0 %v286_v0  ;;  %215 = vmatprep.mubr.msk.bf16.mxu0 %vm287_vm0, %v286_v0  ;;  %v228_v3 = vld [vmem:[#allocation2 + $0x8] sm:$0xff]   ;;  %v229_v4 = vld [vmem:[#allocation2 + $0x10] sm:$0xff]   ;;  %v150_v5 = vld [vmem:[%s350_s2] sm:$0xff]  ;;  %s289_s7 = smov [#allocation5]  }
  0x15   :  { %226 = vset.pattern.permute.xlu0 %v288_v1  ;;  %200 = vmatpush3.bf16.msra.mxu0 %v227_v2  ;;  %v230_v6 = vld [vmem:[#allocation2 + $0x18] sm:$0xff]   ;;  %v231_v7 = vld [vmem:[#allocation2 + $0x20] sm:$0xff]   ;;  %v232_v8 = vld [vmem:[#allocation2 + $0x28] sm:$0xff]   ;;  %s172_s8 = sshll.u32 %s289_s7, 4  ;;  %s173_s8 = int_to_ptr.vmem [resolvable:$true] %s172_s8 }
  0x16   :  { %201 = vmatprep.subr.bf16.mxu0 %v286_v0  ;;  %153 = vperm.xlu0 %226, %v150_v5   ;;  %v233_v9 = vld [vmem:[#allocation2 + $0x30] sm:$0xff]   ;;  %v234_v10 = vld [vmem:[#allocation2 + $0x38] sm:$0xff]   ;;  %v39_v11 = vld [vmem:[%s348_s0] sm:$0xf]  ;;  %s257_s9 = scalar_lea.vmem %s173_s8, 128  ;;  %p262_p9 = scmp.lt.s32.totalorder %s173_s8, %s173_s8 }
  0x17   :  { %v189_v16 = vld [vmem:[%s351_s3] ss:$0 sm:$0xff]  ;;  %p258_p8 = scmp.ne.s32.totalorder %s173_s8, %s257_s9  ;;  %p263_p10 = scmp.lt.s32.totalorder %s257_s9, %s257_s9 }
  0x19   :  { %202 = vmatpush3.bf16.msra.mxu0 %v228_v3  ;;  %p264_p11 = por %p263_p10, %p262_p9 }
  0x1a   :  { %203 = vmatprep.subr.bf16.mxu0 %v286_v0 }
  0x1b   :  { %p265_p12 = pnand %p264_p11, %p258_p8 }
  0x1d   :  { %204 = vmatpush3.bf16.msra.mxu0 %v229_v4 }
  0x1e   :  { %205 = vmatprep.subr.bf16.mxu0 %v286_v0 }
  0x21   :  { %206 = vmatpush3.bf16.msra.mxu0 %v230_v6 }
  0x22   :  { %207 = vmatprep.subr.bf16.mxu0 %v286_v0 }
  0x25   :  { %208 = vmatpush3.bf16.msra.mxu0 %v231_v7 }
  0x26   :  { %209 = vmatprep.subr.bf16.mxu0 %v286_v0 }
  0x29   :  { %210 = vmatpush3.bf16.msra.mxu0 %v232_v8 }
  0x2a   :  { %211 = vmatprep.subr.bf16.mxu0 %v286_v0 }
  0x2d   :  { %212 = vmatpush3.bf16.msra.mxu0 %v233_v9 }
  0x2e   :  { %213 = vmatprep.subr.bf16.mxu0 %v286_v0 }
  0x31   :  { %214 = vmatpush3.bf16.msra.mxu0 %v234_v10 }
  0x34   :  { %216 = vmatmul.mubr.bf16.vlgmr.msra.gmra.mrb[0].mxu0 %v39_v11 }
  0x95   :  { %v154_v13 = vpop.permute.xlu0 %153 }
 0x107   :  { %v138_v12 = vpop.f32.mrb[0].mxu0 }
 0x108   :  { %v217_v14 = vpop.f32.mrb[1].mxu0  ;;  %v156_v18 = vmul.f32 %v154_v13, %v138_v12 }
 0x109   :  { %v141_v15 = vpop.f32.mrb[2].mxu0 }
 0x10a   :  { %v218_v17 = vpop.f32.mrb[3].mxu0  ;;  %v164_v19 = vmul.f32 %v189_v16, %v156_v18 }
 0x10c   :  { %165 = vst [vmem:[#allocation5] sm:$0xff] %v164_v19 }
 0x10d   :  { %268 = shalt.err (!%p265_p12)
}
 0x10e   :  { %s269_s11 = scalar_lea.hbm %s352_s4, 128 }
 0x10f   :  { %p270_p13 = scmp.ne.s32.totalorder %s352_s4, %s269_s11  ;;  %p273_p0 = scmp.lt.u32.totalorder %s269_s11, %s352_s4 }
 0x111   :  { %p275_p1 = pnand %p273_p0, %p270_p13 }
 0x113   :  { %278 = shalt.err (!%p275_p1)
}
 0x114   :  { %175 = dma.vmem_to_hbm [thread:$0]  %s173_s8, 128, %s352_s4, [#allocation4]  }
 0x115   :  { %281 = dma.done.wait [#allocation4], 128  }
 0x116   :  { %282 = vsyncadd [#allocation4], 4294967168 }
 0x117   :  { %179 = vsyncpa [#allocation3], 1 }
 0x118   :  { %180 = vsyncpa [#allocation4], 1 }

</bundles_post_ra>
